<compile_context>
chip_gen: v7x
topology: tpu7x:2x2x1
jax: 0.10.0
libtpu: 0.0.40
codegen_flags: <defaults>
</compile_context>

<pallas_src>
import functools

import numpy as np
import jax
import jax.numpy as jnp
from jax import lax
from jax.experimental import pallas as pl
from jax.experimental.pallas import tpu as pltpu


# ---------------------------------------------------------------------------
# helpers
# ---------------------------------------------------------------------------
def _rup16(n):
    return ((n + 15) // 16) * 16


def _silu(v):
    # exp on the EUP; approx reciprocal also goes to the EUP (err ~1e-3 rel,
    # far inside the validation tolerance).
    if hasattr(pl, "reciprocal"):
        return v * pl.reciprocal(1.0 + jnp.exp(-v), approx=True)
    return v * (1.0 / (1.0 + jnp.exp(-v)))


_ROLL_IS_JNP = None


def _roll_matches_jnp():
    """pltpu.roll is documented to follow jnp.roll semantics; verify the lane
    rotation sign convention once on the real backend so a convention change
    across jax/libtpu releases cannot silently transpose the 3x3 stencil."""
    global _ROLL_IS_JNP
    if _ROLL_IS_JNP is None:
        def probe(x_ref, o_ref):
            o_ref[...] = pltpu.roll(x_ref[...], 3, axis=1)

        x = jnp.arange(8 * 128, dtype=jnp.float32).reshape(8, 128)
        y = pl.pallas_call(
            probe, out_shape=jax.ShapeDtypeStruct((8, 128), jnp.float32))(x)
        _ROLL_IS_JNP = bool(jnp.array_equal(y, jnp.roll(x, 3, axis=1)))
    return _ROLL_IS_JNP


# ---------------------------------------------------------------------------
# fused UpResBlock kernel: one invocation processes the whole batch
# ---------------------------------------------------------------------------
def _upresblock_kernel(x_ref, temb_ref,
                       g0_ref, b0_ref, w0_ref, cb0_ref,
                       g1_ref, b1_ref, w1_ref, cb1_ref,
                       g2_ref, b2_ref, w2_ref, cb2_ref,
                       skw_ref, skb_ref,
                       o_ref, *, N, H, W, c_final, cin_real, eps,
                       roll_is_jnp):
    HW = H * W

    # Wrap masks for the dx=+-1 taps, hoisted once; (1, HW) booleans broadcast
    # over sublanes inside jnp.where -> cost independent of channel count.
    if W & (W - 1) == 0:
        col = lax.broadcasted_iota(jnp.int32, (1, HW), 1) & (W - 1)
    else:
        col = lax.broadcasted_iota(jnp.int32, (1, HW), 1) % W
    keep_r = col < (W - 1)   # columns whose dx=+1 neighbour does not wrap
    keep_l = col >= 1        # columns whose dx=-1 neighbour does not wrap

    def make_roll_cache(a):
        # Deduplicated XLU lane rotations: view(d)[:, i] = a[:, (i + d) % HW].
        cache = {}

        def get(d):
            dd = d % HW
            if dd not in cache:
                if dd == 0:
                    cache[dd] = a
                else:
                    s = (-dd) % HW if roll_is_jnp else dd
                    cache[dd] = pltpu.roll(a, s, axis=1)
            return cache[dd]

        return get

    def tap(get, dy, dx):
        # out[:, y*W + x] = a[:, ((y+dy)%H)*W + (x+dx)%W]   (circular padding)
        d = dy * W + dx
        if dx == 0:
            return get(d)
        main = get(d)
        wrap = get(d - W) if dx > 0 else get(d + W)
        keep = keep_r if dx > 0 else keep_l
        return jnp.where(keep, main, wrap)

    def norm_conv_silu(h_list, n_real, g_ref, b_ref, w_ref, cb_ref):
        # h_list: per-sample (Cp, HW) f32; rows >= n_real are exactly zero.
        inv_cnt = 1.0 / float(n_real * HW)
        stacks = []
        for h in h_list:
            # nn.LayerNorm((C, H, W)): stats over the whole real sample.
            # Single-pass E[x], E[x^2]; padded zero-rows add nothing to the
            # sums, so we divide by the real element count.  (Row-wise partial
            # sums are exact only because every row has the same length HW --
            # keep that in mind for any future masked/ragged variant.)
            s1 = jnp.sum(h, axis=1, keepdims=True)
            s2 = jnp.sum(h * h, axis=1, keepdims=True)
            mu = jnp.sum(s1, axis=0, keepdims=True) * inv_cnt
            ex2 = jnp.sum(s2, axis=0, keepdims=True) * inv_cnt
            var = ex2 - mu * mu
            # padded rows of g/b are zero -> padded rows of hn stay exactly 0.
            hn = ((h - mu) * lax.rsqrt(var + eps) * g_ref[...] + b_ref[...]
                  ).astype(jnp.bfloat16)
            # im2col stack: 9 lane-rotated (Cp, HW) bf16 views concatenated
            # along sublanes; each chunk is a full 16-row bf16 group (aligned).
            get = make_roll_cache(hn)
            stacks.append(jnp.concatenate(
                [tap(get, dy, dx) for dy in (-1, 0, 1) for dx in (-1, 0, 1)],
                axis=0))                                    # (9*Cp, HW) bf16
        big = stacks[0] if N == 1 else jnp.concatenate(stacks, axis=1)
        # ONE stacked GEMM per layer: (Cp, 9*Cp) @ (9*Cp, N*HW), f32 accum.
        out = jnp.dot(w_ref[...], big, preferred_element_type=jnp.float32)
        out = _silu(out + cb_ref[...])                      # (Cp, N*HW) f32
        return [out[:, n * HW:(n + 1) * HW] for n in range(N)]

    x_list = [x_ref[n] for n in range(N)]                   # (Cp, HW) f32
    h_list = [x_list[n] + temb_ref[n] for n in range(N)]    # + time embedding

    h_list = norm_conv_silu(h_list, cin_real[0], g0_ref, b0_ref, w0_ref, cb0_ref)
    h_list = norm_conv_silu(h_list, cin_real[1], g1_ref, b1_ref, w1_ref, cb1_ref)
    h_list = norm_conv_silu(h_list, cin_real[2], g2_ref, b2_ref, w2_ref, cb2_ref)

    # 1x1 skip conv, merged over the batch along lanes.
    x_all = x_list[0] if N == 1 else jnp.concatenate(x_list, axis=1)
    skip = jnp.dot(skw_ref[...], x_all.astype(jnp.bfloat16),
                   preferred_element_type=jnp.float32) + skb_ref[...]
    for n in range(N):
        o_ref[n] = (h_list[n][:c_final]
                    + skip[:, n * HW:(n + 1) * HW]).astype(o_ref.dtype)


def upresblock_forward(kp, x, t, *, eps=1e-5, roll_is_jnp=True):
    """x: (N, C, H, W) float32, t: (N, time_emb_dim) float32."""
    N, C, H, W = x.shape
    HW = H * W
    CQ = C // 4
    Cp = _rup16(C)
    cin_real = (C, C // 2, C // 4)      # real LayerNorm channel counts

    # time-embedding MLP (Linear -> SiLU -> Linear) hoisted to XLA: a 100x16
    # matvec would waste a near-empty MXU push inside the kernel.
    h1 = t @ kp['te1_w'] + kp['te1_b']
    h1 = h1 * jax.nn.sigmoid(h1)
    temb = h1 @ kp['te2_w'] + kp['te2_b']                   # (N, C)

    x2 = x.reshape(N, C, HW).astype(jnp.float32)
    temb3 = temb[:, :, None].astype(jnp.float32)
    if Cp != C:   # zero-pad channels so padded rows stay exactly zero
        x2 = jnp.pad(x2, ((0, 0), (0, Cp - C), (0, 0)))
        temb3 = jnp.pad(temb3, ((0, 0), (0, Cp - C), (0, 0)))

    l0, l1, l2 = kp['layers']
    args = (x2, temb3,
            l0['g'], l0['b'], l0['w'], l0['cb'],
            l1['g'], l1['b'], l1['w'], l1['cb'],
            l2['g'], l2['b'], l2['w'], l2['cb'],
            kp['skip_w'], kp['skip_b'])

    # Total resident footprint is << 1 MiB: no grid, no tiling, everything
    # lands whole-array in VMEM (intentionally no BlockSpec pipelining).
    out = pl.pallas_call(
        functools.partial(_upresblock_kernel, N=N, H=H, W=W, c_final=CQ,
                          cin_real=cin_real, eps=eps, roll_is_jnp=roll_is_jnp),
        out_shape=jax.ShapeDtypeStruct((N, CQ, HW), jnp.float32),
    )(*args)
    return out.reshape(N, CQ, H, W)


# ---------------------------------------------------------------------------
# parameters (PyTorch-style layout) + one-time kernel relayout
# ---------------------------------------------------------------------------
def init_upresblock_params(key, in_c, size, time_emb_dim=100):
    assert in_c % 4 == 0
    keys = iter(jax.random.split(key, 24))

    def nrm(shape, scale):
        return scale * jax.random.normal(next(keys), shape, jnp.float32)

    C = in_c
    p = dict(
        te1_w=nrm((time_emb_dim, C), 1.0 / np.sqrt(time_emb_dim)),
        te1_b=nrm((C,), 0.02),
        te2_w=nrm((C, C), 1.0 / np.sqrt(C)),
        te2_b=nrm((C,), 0.02),
        skip_w=nrm((C // 4, C, 1, 1), 1.0 / np.sqrt(C)),
        skip_b=nrm((C // 4,), 0.02),
        layers=[])
    for (ci, co) in [(C, C // 2), (C // 2, C // 4), (C // 4, C // 4)]:
        p['layers'].append(dict(
            ln_g=1.0 + nrm((ci, size, size), 0.05),
            ln_b=nrm((ci, size, size), 0.05),
            w=nrm((co, ci, 3, 3), 1.0 / np.sqrt(ci * 9)),
            b=nrm((co,), 0.02)))
    return p


def prepare_kernel_params(p):
    """One-time relayout: conv weights pre-stacked to (Cout_pad, 9*Cin_pad)
    bf16 with tap order k = (dy+1)*3 + (dx+1); channel dims zero-padded to
    multiples of 16 so every in-kernel concat / GEMM operand is vreg-aligned.
    (Only jnp arrays in this dict: static ints are re-derived from shapes in
    the wrapper so the dict can be a jit argument.)"""
    C = p['te2_w'].shape[0]
    Cp = _rup16(C)
    kp = dict(
        te1_w=p['te1_w'], te1_b=p['te1_b'],
        te2_w=p['te2_w'], te2_b=p['te2_b'],
        layers=[])
    skw = p['skip_w'].reshape(p['skip_w'].shape[0], -1)            # (C/4, C)
    kp['skip_w'] = jnp.pad(skw, ((0, 0), (0, Cp - C))).astype(jnp.bfloat16)
    kp['skip_b'] = p['skip_b'].reshape(-1, 1).astype(jnp.float32)
    for lyr in p['layers']:
        co, ci = lyr['w'].shape[:2]
        hw = lyr['ln_g'].shape[1] * lyr['ln_g'].shape[2]
        ci_p, co_p = _rup16(ci), _rup16(co)
        w9 = jnp.transpose(lyr['w'], (0, 2, 3, 1)).reshape(co, 9, ci)
        wp = jnp.zeros((co_p, 9, ci_p), jnp.float32).at[:co, :, :ci].set(w9)
        g = jnp.zeros((ci_p, hw), jnp.float32).at[:ci].set(
            lyr['ln_g'].reshape(ci, hw))
        b = jnp.zeros((ci_p, hw), jnp.float32).at[:ci].set(
            lyr['ln_b'].reshape(ci, hw))
        cb = jnp.zeros((co_p, 1), jnp.float32).at[:co, 0].set(lyr['b'])
        kp['layers'].append(dict(
            g=g, b=b,
            w=wp.reshape(co_p, 9 * ci_p).astype(jnp.bfloat16),
            cb=cb))
    return kp


# ---------------------------------------------------------------------------
# pure-JAX (XLA) reference of UpResBlock.forward, for validation
# ---------------------------------------------------------------------------
def _silu_ref(v):
    return v * jax.nn.sigmoid(v)


def upresblock_reference(p, x, t, *, eps=1e-5):
    temb = _silu_ref(t @ p['te1_w'] + p['te1_b']) @ p['te2_w'] + p['te2_b']
    h = x + temb[:, :, None, None]
    for lyr in p['layers']:
        mu = jnp.mean(h, axis=(1, 2, 3), keepdims=True)
        var = jnp.mean((h - mu) ** 2, axis=(1, 2, 3), keepdims=True)
        hn = (h - mu) * lax.rsqrt(var + eps) * lyr['ln_g'][None] + lyr['ln_b'][None]
        hp = jnp.pad(hn, ((0, 0), (0, 0), (1, 1), (1, 1)), mode='wrap')
        conv = lax.conv_general_dilated(
            hp, lyr['w'], window_strides=(1, 1), padding='VALID',
            dimension_numbers=('NCHW', 'OIHW', 'NCHW'))
        h = _silu_ref(conv + lyr['b'][None, :, None, None])
    skip = (jnp.einsum('nchw,oc->nohw', x, p['skip_w'][:, :, 0, 0])
            + p['skip_b'][None, :, None, None])
    return h + skip


# ---------------------------------------------------------------------------
# main
# ---------------------------------------------------------------------------
if __name__ == "__main__":
    N, C, SIZE, TED = 2, 16, 16, 100

    key = jax.random.PRNGKey(0)
    kparam, kx, kt = jax.random.split(key, 3)

    params = init_upresblock_params(kparam, C, SIZE, TED)
    kernel_params = prepare_kernel_params(params)

    x = jax.random.normal(kx, (N, C, SIZE, SIZE), jnp.float32)
    t = jax.random.normal(kt, (N, TED), jnp.float32)

    fwd = jax.jit(functools.partial(
        upresblock_forward, eps=1e-5, roll_is_jnp=_roll_matches_jnp()))

    out = jax.block_until_ready(fwd(kernel_params, x, t))

    assert out.shape == (N, C // 4, SIZE, SIZE)
    assert bool(jnp.all(jnp.isfinite(out)))

    ref = upresblock_reference(params, x, t, eps=1e-5)
    max_err = float(jnp.max(jnp.abs(out - ref)))
    assert max_err < 5e-2, f"kernel/reference mismatch: max |err| = {max_err}"

    print("KERNEL_OK")
</pallas_src>

<mosaic_0001>
module attributes {stable_mosaic.version = 11 : i64} {
  func.func @probe(%arg0: memref<8x128xf32, #tpu.memory_space<vmem>>, %arg1: memref<8x128xf32, #tpu.memory_space<vmem>>) attributes {dimension_semantics = [], scalar_prefetch = 0 : i64, scratch_operands = 0 : i64, tpu.core_type = #tpu.core_type<tc>} {
    %c0 = arith.constant 0 : index
    %c0_0 = arith.constant 0 : index
    %0 = vector.load %arg0[%c0, %c0_0] : memref<8x128xf32, #tpu.memory_space<vmem>>, vector<8x128xf32>
    %c3_i32 = arith.constant 3 : i32
    %1 = tpu.dynamic_rotate %0 by %c3_i32 dim 1 : vector<8x128xf32>, i32 -> vector<8x128xf32>
    %c0_1 = arith.constant 0 : index
    %c0_2 = arith.constant 0 : index
    %2 = vector.load %arg1[%c0_1, %c0_2] : memref<8x128xf32, #tpu.memory_space<vmem>>, vector<8x128xf32>
    tpu.vector_store %arg1[%c0_1, %c0_2], %1 {strides = array<i32>} : memref<8x128xf32, #tpu.memory_space<vmem>>, vector<8x128xf32>,
    return
  }
}

</mosaic_0001>

<bundles_post_ra>
// kernel: tpu_custom_call.1
= control target key start
LH: loop header
LB: loop body
LE: loop exit
PB: predicated region body
PF: predicated region fallthrough
CT: control target
= control target key end

     0   :  { %6 = vsyncpa [#allocation3], 0  ;;  %s128_s0 = inlined_call_operand.hbm [shape: f32[8,128], index: 0, kind: input, shape index: {}]   ;;  %s129_s1 = inlined_call_operand.hbm [shape: f32[8,128], index: 1, kind: output, shape index: {}]  }
   0x1   :  { %7 = vsyncpa [#allocation4], 0  ;;  %s91_s6 = smov [#allocation2]   ;;  %s43_s10 = scalar_lea.hbm %s128_s0, 128 }
   0x2   :  { %s14_s7 = sshll.u32 %s91_s6, 4  ;;  %p44_p0 = scmp.ne.s32.totalorder %s128_s0, %s43_s10  ;;  %s15_s7 = int_to_ptr.vmem [resolvable:$true] %s14_s7 }
   0x3   :  { %p47_p1 = scmp.lt.u32.totalorder %s43_s10, %s128_s0 }
   0x5   :  { %p49_p2 = pnand %p47_p1, %p44_p0 }
   0x7   :  { %52 = shalt.err (!%p49_p2)
}
   0x8   :  { %s53_s15 = scalar_lea.vmem %s15_s7, 128  ;;  %p58_p4 = scmp.lt.s32.totalorder %s15_s7, %s15_s7 }
   0x9   :  { %p54_p3 = scmp.ne.s32.totalorder %s15_s7, %s53_s15  ;;  %p59_p5 = scmp.lt.s32.totalorder %s53_s15, %s53_s15 }
   0xb   :  { %p60_p6 = por %p59_p5, %p58_p4 }
   0xd   :  { %p61_p7 = pnand %p60_p6, %p54_p3 }
   0xf   :  { %64 = shalt.err (!%p61_p7)
}
  0x10   :  { %17 = dma.hbm_to_vmem [thread:$0]  %s128_s0, 128, %s15_s7, [#allocation3]  }
  0x11   :  { %87 = dma.done.wait [#allocation3], 128  }
  0x12   :  { %88 = vsyncadd [#allocation3], 4294967168  ;;  %v21_v0 = vld [vmem:[#allocation2] sm:$0xff]  ;;  %s92_s18 = smov 3   ;;  %s93_s19 = smov [#allocation5]  }
  0x13   :  { %22 = vrot.lane.b32.xlu0 %v21_v0, %s92_s18  ;;  %s31_s20 = sshll.u32 %s93_s19, 4  ;;  %s32_s20 = int_to_ptr.vmem [resolvable:$true] %s31_s20 }
  0x14   :  { %s65_s21 = scalar_lea.vmem %s32_s20, 128  ;;  %p70_p9 = scmp.lt.s32.totalorder %s32_s20, %s32_s20 }
  0x15   :  { %p66_p8 = scmp.ne.s32.totalorder %s32_s20, %s65_s21  ;;  %p71_p10 = scmp.lt.s32.totalorder %s65_s21, %s65_s21 }
  0x17   :  { %p72_p11 = por %p71_p10, %p70_p9 }
  0x19   :  { %p73_p12 = pnand %p72_p11, %p66_p8 }
  0x85   :  { %v23_v1 = vpop.permute.xlu0 %22 }
  0x86   :  { %24 = vst [vmem:[#allocation5] sm:$0xff] %v23_v1 }
  0x87   :  { %76 = shalt.err (!%p73_p12)
}
  0x88   :  { %s77_s0 = scalar_lea.hbm %s129_s1, 128 }
  0x89   :  { %p78_p13 = scmp.ne.s32.totalorder %s129_s1, %s77_s0  ;;  %p81_p0 = scmp.lt.u32.totalorder %s77_s0, %s129_s1 }
  0x8b   :  { %p83_p1 = pnand %p81_p0, %p78_p13 }
  0x8d   :  { %86 = shalt.err (!%p83_p1)
}
  0x8e   :  { %34 = dma.vmem_to_hbm [thread:$0]  %s32_s20, 128, %s129_s1, [#allocation4]  }
  0x8f   :  { %89 = dma.done.wait [#allocation4], 128  }
  0x90   :  { %90 = vsyncadd [#allocation4], 4294967168 }
  0x91   :  { %38 = vsyncpa [#allocation3], 1 }
  0x92   :  { %39 = vsyncpa [#allocation4], 1 }

</bundles_post_ra>
